<compile_context>
chip_gen: v7x
topology: tpu7x:2x2x1
jax: 0.10.0
libtpu: 0.0.40
codegen_flags: <defaults>
</compile_context>

<pallas_src>
import functools

import jax
import jax.numpy as jnp
from jax import lax
from jax.experimental import pallas as pl
from jax.experimental.pallas import tpu as pltpu


def _global_pointer_kernel(x_ref, wq_ref, wk_ref, bq_ref, bk_ref,
                           cos_ref, sina_ref, sinb_ref, am_ref,
                           o_ref, k_scr, *, TQ, L, Dp, mask_c):
    """One grid step = (batch b, entity type e, query tile qt).

    x_ref    : (1, L, H2)    bf16  hidden states of batch b (full sequence)
    wq/wk    : (1, H2, Dp)   bf16  per-entity dense weights, D zero-padded to Dp
                                   (1/sqrt(D) folded into wq)
    bq/bk    : (1, 1, Dp)    f32   per-entity dense bias (scale folded into bq)
    cos      : (L, Dp)       f32   RoPE cos table (repeat_interleave(2), padded)
    sina/b   : (L, Dp)       f32   sign-folded RoPE sin tables (see wrapper)
    am_ref   : (1, 1, L)     f32   attention mask for batch b
    o_ref    : (1, 1, TQ, L) f32   logits tile
    k_scr    : (L, Dp)       bf16  RoPE'd key projection, carried across qt
    """
    qt = pl.program_id(2)

    def rope(t, c, sa, sb):
        # t*cos + rot(t)*sin with rot(t)[2k] = -t[2k+1], rot(t)[2k+1] = t[2k];
        # the +/- and even/odd selection is folded into the sa / sb tables, so
        # only two XLU rolls and VPU multiply-adds remain.
        left = pltpu.roll(t, shift=Dp - 1, axis=1)   # t[:, i+1]
        right = pltpu.roll(t, shift=1, axis=1)       # t[:, i-1]
        return t * c + left * sa + right * sb

    # ---- K projection + RoPE: once per (b, e), reused across query tiles. ----
    @pl.when(qt == 0)
    def _():
        h = x_ref[0]                                               # (L, H2) bf16
        kw = jnp.dot(h, wk_ref[0], preferred_element_type=jnp.float32)
        kw = kw + bk_ref[0]
        kw = rope(kw, cos_ref[...], sina_ref[...], sinb_ref[...])
        k_scr[...] = kw.astype(k_scr.dtype)

    # ---- Q projection + RoPE for this query tile only. ----
    q0 = pl.multiple_of(qt * TQ, TQ)
    h_q = x_ref[0, pl.ds(q0, TQ), :]                               # (TQ, H2)
    qw = jnp.dot(h_q, wq_ref[0], preferred_element_type=jnp.float32)
    qw = qw + bq_ref[0]                                            # scale pre-folded
    qw = rope(qw,
              cos_ref[pl.ds(q0, TQ), :],
              sina_ref[pl.ds(q0, TQ), :],
              sinb_ref[pl.ds(q0, TQ), :])

    # ---- logits: contract the (padded) head dim; no explicit transpose. ----
    lg = lax.dot_general(qw.astype(jnp.bfloat16), k_scr[...],
                         dimension_numbers=(((1,), (1,)), ((), ())),
                         preferred_element_type=jnp.float32)       # (TQ, L)

    # ---- padding mask (keys) + causal (tril) mask; 1/sqrt(D) already folded. ----
    pad = jnp.broadcast_to(am_ref[0], (TQ, L))                     # mask key axis
    row = q0 + lax.broadcasted_iota(jnp.int32, (TQ, L), 0)
    col = lax.broadcasted_iota(jnp.int32, (TQ, L), 1)
    tril = (row > col).astype(jnp.float32)
    o_ref[0, 0] = lg * pad - ((1.0 - pad) + tril) * mask_c


def global_pointer_pallas(x, attention_mask, W, b, *, ent_type_size, inner_dim,
                          q_tile=None):
    """x: (B, L, 2H), attention_mask: (B, L), W: (2H, E*2D), b: (E*2D,)."""
    B, L, H2 = x.shape
    E, D = ent_type_size, inner_dim
    Dp = max(128, ((D + 127) // 128) * 128)          # lane-aligned head dim
    scale = 1.0 / (D ** 0.5)

    # Query-row tile: full L for short sequences, else a 128/256-row tile.
    if q_tile is None:
        q_tile = L
        for cand in (256, 128):
            if L % cand == 0:
                q_tile = cand
                break
    TQ = q_tile
    assert L % TQ == 0, "q_tile must divide L"

    # Per-entity weight / bias blocks: (E, H2, Dp) and (E, 1, Dp), zero-padded.
    # Fold the 1/sqrt(D) output scale into the q-side parameters.
    pad_cols = Dp - D
    W_r = W.reshape(H2, E, 2 * D)
    Wq = jnp.transpose(W_r[:, :, :D], (1, 0, 2))     # (E, H2, D)
    Wk = jnp.transpose(W_r[:, :, D:], (1, 0, 2))     # (E, H2, D)
    b_r = b.reshape(E, 1, 2 * D)
    Wq = jnp.pad(Wq * scale, ((0, 0), (0, 0), (0, pad_cols))).astype(jnp.bfloat16)
    Wk = jnp.pad(Wk, ((0, 0), (0, 0), (0, pad_cols))).astype(jnp.bfloat16)
    bq = jnp.pad(b_r[:, :, :D] * scale, ((0, 0), (0, 0), (0, pad_cols))).astype(jnp.float32)
    bk = jnp.pad(b_r[:, :, D:], ((0, 0), (0, 0), (0, pad_cols))).astype(jnp.float32)

    # RoPE tables (L, Dp), NOT tiled over E. The +/- even/odd sign pattern of the
    # pair rotation is folded into sin_a / sin_b so the kernel needs no iota/where:
    #   rope(t)[i] = t[i]*cos[i] + t[i+1]*sin_a[i] + t[i-1]*sin_b[i]
    pos = jnp.arange(L, dtype=jnp.float32)[:, None]
    theta = 10000.0 ** (-2.0 * jnp.arange(D // 2, dtype=jnp.float32) / D)
    ang = pos * theta                                # (L, D/2)
    cos_pos = jnp.repeat(jnp.cos(ang), 2, axis=-1)   # (L, D)
    sin_pos = jnp.repeat(jnp.sin(ang), 2, axis=-1)   # (L, D)
    even = (jnp.arange(D) % 2) == 0
    sin_a = jnp.where(even[None, :], -sin_pos, 0.0)  # multiplies t[:, i+1]
    sin_b = jnp.where(even[None, :], 0.0, sin_pos)   # multiplies t[:, i-1]
    cos_t = jnp.pad(cos_pos, ((0, 0), (0, pad_cols))).astype(jnp.float32)
    sin_a = jnp.pad(sin_a, ((0, 0), (0, pad_cols))).astype(jnp.float32)
    sin_b = jnp.pad(sin_b, ((0, 0), (0, pad_cols))).astype(jnp.float32)

    am = attention_mask.astype(jnp.float32).reshape(B, 1, L)
    x_bf = x.astype(jnp.bfloat16)

    kernel = functools.partial(_global_pointer_kernel, TQ=TQ, L=L, Dp=Dp,
                               mask_c=float(1e12 * scale))

    grid = (B, E, L // TQ)
    return pl.pallas_call(
        kernel,
        out_shape=jax.ShapeDtypeStruct((B, E, L, L), jnp.float32),
        grid_spec=pltpu.PrefetchScalarGridSpec(
            num_scalar_prefetch=0,
            grid=grid,
            in_specs=[
                pl.BlockSpec((1, L, H2), lambda bi, ei, qi: (bi, 0, 0)),   # x
                pl.BlockSpec((1, H2, Dp), lambda bi, ei, qi: (ei, 0, 0)),  # Wq
                pl.BlockSpec((1, H2, Dp), lambda bi, ei, qi: (ei, 0, 0)),  # Wk
                pl.BlockSpec((1, 1, Dp), lambda bi, ei, qi: (ei, 0, 0)),   # bq
                pl.BlockSpec((1, 1, Dp), lambda bi, ei, qi: (ei, 0, 0)),   # bk
                pl.BlockSpec((L, Dp), lambda bi, ei, qi: (0, 0)),          # cos
                pl.BlockSpec((L, Dp), lambda bi, ei, qi: (0, 0)),          # sin_a
                pl.BlockSpec((L, Dp), lambda bi, ei, qi: (0, 0)),          # sin_b
                pl.BlockSpec((1, 1, L), lambda bi, ei, qi: (bi, 0, 0)),    # mask
            ],
            out_specs=pl.BlockSpec((1, 1, TQ, L),
                                   lambda bi, ei, qi: (bi, ei, qi, 0)),
            scratch_shapes=[pltpu.VMEM((L, Dp), jnp.bfloat16)],            # RoPE'd K
        ),
        compiler_params=pltpu.CompilerParams(
            # B, E independent -> shard across v7x's 2 TensorCores;
            # query-tile axis carries the K scratch -> must stay sequential.
            dimension_semantics=("parallel", "parallel", "arbitrary"),
        ),
    )(x_bf, Wq, Wk, bq, bk, cos_t, sin_a, sin_b, am)


def global_pointer_reference(x, attention_mask, W, b, *, ent_type_size, inner_dim):
    """Pure-JAX mirror of the PyTorch forward (encoder = identity), f32 throughout."""
    E, D = ent_type_size, inner_dim
    B, L, _ = x.shape
    out = jnp.einsum('blh,ho->blo', x, W) + b
    out = out.reshape(B, L, E, 2 * D)
    qw, kw = out[..., :D], out[..., D:]
    pos = jnp.arange(L, dtype=jnp.float32)[:, None]
    theta = 10000.0 ** (-2.0 * jnp.arange(D // 2, dtype=jnp.float32) / D)
    ang = pos * theta
    cos_pos = jnp.repeat(jnp.cos(ang), 2, axis=-1)[None, :, None, :]
    sin_pos = jnp.repeat(jnp.sin(ang), 2, axis=-1)[None, :, None, :]

    def rot(t):
        return jnp.stack([-t[..., 1::2], t[..., ::2]], axis=-1).reshape(t.shape)

    qw = qw * cos_pos + rot(qw) * sin_pos
    kw = kw * cos_pos + rot(kw) * sin_pos
    logits = jnp.einsum('bmhd,bnhd->bhmn', qw, kw)
    pad = jnp.broadcast_to(attention_mask[:, None, None, :].astype(jnp.float32),
                           logits.shape)
    logits = logits * pad - (1.0 - pad) * 1e12
    tril = jnp.tril(jnp.ones_like(logits), -1)
    logits = logits - tril * 1e12
    return logits / (D ** 0.5)


if __name__ == "__main__":
    # Small, deterministic configuration.
    B, L = 2, 8
    H_enc = 16                  # encoder_hidden_size
    H2 = 2 * H_enc              # dense input dim = encoder_hidden_size * 2
    E = 4                       # ent_type_size
    D = 32                      # inner_dim

    key = jax.random.PRNGKey(0)
    kx, kw, kb = jax.random.split(key, 3)

    # Encoder output (identity encoder) and attention mask (second example padded).
    x = jax.random.normal(kx, (B, L, H2), dtype=jnp.float32)
    attention_mask = jnp.array(
        [[1, 1, 1, 1, 1, 1, 1, 1],
         [1, 1, 1, 1, 1, 0, 0, 0]], dtype=jnp.float32)

    # Deterministic dense parameters: Linear(H2 -> E * 2D) in (in, out) layout.
    W = 0.05 * jax.random.normal(kw, (H2, E * 2 * D), dtype=jnp.float32)
    b = 0.05 * jax.random.normal(kb, (E * 2 * D,), dtype=jnp.float32)

    out = global_pointer_pallas(x, attention_mask, W, b,
                                ent_type_size=E, inner_dim=D)
    out = jax.block_until_ready(out)

    ref = global_pointer_reference(x, attention_mask, W, b,
                                   ent_type_size=E, inner_dim=D)
    assert out.shape == (B, E, L, L)
    # bf16 MXU inputs with f32 accumulation -> slightly relaxed tolerance vs f32 ref.
    assert jnp.allclose(out, ref, rtol=2e-3, atol=3e-2), "mismatch vs reference"

    print("KERNEL_OK")
</pallas_src>

<mosaic_0001>
module attributes {stable_mosaic.version = 11 : i64} {
  func.func @_global_pointer_kernel(%arg0: i32, %arg1: i32, %arg2: i32, %arg3: memref<1x8x32xbf16, #tpu.memory_space<vmem>>, %arg4: memref<1x32x128xbf16, #tpu.memory_space<vmem>>, %arg5: memref<1x32x128xbf16, #tpu.memory_space<vmem>>, %arg6: memref<1x1x128xf32, #tpu.memory_space<vmem>>, %arg7: memref<1x1x128xf32, #tpu.memory_space<vmem>>, %arg8: memref<8x128xf32, #tpu.memory_space<vmem>>, %arg9: memref<8x128xf32, #tpu.memory_space<vmem>>, %arg10: memref<8x128xf32, #tpu.memory_space<vmem>>, %arg11: memref<1x1x8xf32, #tpu.memory_space<vmem>>, %arg12: memref<1x1x8x8xf32, #tpu.memory_space<vmem>>, %arg13: memref<8x128xbf16, #tpu.memory_space<vmem>>) attributes {dimension_semantics = [#tpu.dimension_semantics<parallel>, #tpu.dimension_semantics<parallel>, #tpu.dimension_semantics<arbitrary>], iteration_bounds = array<i64: 2, 4, 1>, scalar_prefetch = 0 : i64, scratch_operands = 1 : i64, tpu.core_type = #tpu.core_type<tc>, window_params = [{transform_indices = @transform_0, window_bounds = array<i64: 1, 8, 32>}, {transform_indices = @transform_1, window_bounds = array<i64: 1, 32, 128>}, {transform_indices = @transform_2, window_bounds = array<i64: 1, 32, 128>}, {transform_indices = @transform_3, window_bounds = array<i64: 1, 1, 128>}, {transform_indices = @transform_4, window_bounds = array<i64: 1, 1, 128>}, {pipeline_mode = #tpu.pipeline_mode<synchronous>, transform_indices = @transform_5, window_bounds = array<i64: 8, 128>}, {pipeline_mode = #tpu.pipeline_mode<synchronous>, transform_indices = @transform_6, window_bounds = array<i64: 8, 128>}, {pipeline_mode = #tpu.pipeline_mode<synchronous>, transform_indices = @transform_7, window_bounds = array<i64: 8, 128>}, {transform_indices = @transform_8, window_bounds = array<i64: 1, 1, 8>}, {transform_indices = @transform_9, window_bounds = array<i64: 1, 1, 8, 8>}]} {
    %c0_i32 = arith.constant 0 : i32
    %0 = arith.cmpi eq, %arg2, %c0_i32 : i32
    %1 = arith.extui %0 : i1 to i32
    %c0_i32_0 = arith.constant 0 : i32
    %2 = arith.cmpi ne, %1, %c0_i32_0 : i32
    scf.if %2 {
      %c0_23 = arith.constant 0 : index
      %c0_24 = arith.constant 0 : index
      %c0_25 = arith.constant 0 : index
      %52 = vector.load %arg3[%c0_23, %c0_24, %c0_25] : memref<1x8x32xbf16, #tpu.memory_space<vmem>>, vector<1x8x32xbf16>
      %53 = vector.shape_cast %52 : vector<1x8x32xbf16> to vector<8x32xbf16>
      %c0_26 = arith.constant 0 : index
      %c0_27 = arith.constant 0 : index
      %c0_28 = arith.constant 0 : index
      %54 = vector.load %arg5[%c0_26, %c0_27, %c0_28] : memref<1x32x128xbf16, #tpu.memory_space<vmem>>, vector<1x32x128xbf16>
      %55 = vector.shape_cast %54 : vector<1x32x128xbf16> to vector<32x128xbf16>
      %cst_29 = arith.constant dense<0.000000e+00> : vector<8x128xf32>
      %56 = tpu.matmul %53, %55, %cst_29 {dimension_numbers = #tpu.dot_dimension_numbers<[1], [0], [0], [1], [0, 0, 1, 1], [], []>} : vector<8x32xbf16>, vector<32x128xbf16>, vector<8x128xf32> -> vector<8x128xf32>
      %c0_30 = arith.constant 0 : index
      %c0_31 = arith.constant 0 : index
      %c0_32 = arith.constant 0 : index
      %57 = vector.load %arg7[%c0_30, %c0_31, %c0_32] : memref<1x1x128xf32, #tpu.memory_space<vmem>>, vector<1x1x128xf32>
      %58 = vector.shape_cast %57 : vector<1x1x128xf32> to vector<1x128xf32>
      %59 = vector.broadcast %58 : vector<1x128xf32> to vector<8x128xf32>
      %60 = arith.addf %56, %59 : vector<8x128xf32>
      %c0_33 = arith.constant 0 : index
      %c0_34 = arith.constant 0 : index
      %61 = vector.load %arg8[%c0_33, %c0_34] : memref<8x128xf32, #tpu.memory_space<vmem>>, vector<8x128xf32>
      %c0_35 = arith.constant 0 : index
      %c0_36 = arith.constant 0 : index
      %62 = vector.load %arg9[%c0_35, %c0_36] : memref<8x128xf32, #tpu.memory_space<vmem>>, vector<8x128xf32>
      %c0_37 = arith.constant 0 : index
      %c0_38 = arith.constant 0 : index
      %63 = vector.load %arg10[%c0_37, %c0_38] : memref<8x128xf32, #tpu.memory_space<vmem>>, vector<8x128xf32>
      %c127_i32_39 = arith.constant 127 : i32
      %64 = tpu.dynamic_rotate %60 by %c127_i32_39 dim 1 : vector<8x128xf32>, i32 -> vector<8x128xf32>
      %c1_i32_40 = arith.constant 1 : i32
      %65 = tpu.dynamic_rotate %60 by %c1_i32_40 dim 1 : vector<8x128xf32>, i32 -> vector<8x128xf32>
      %66 = arith.mulf %60, %61 : vector<8x128xf32>
      %67 = arith.mulf %64, %62 : vector<8x128xf32>
      %68 = arith.addf %66, %67 : vector<8x128xf32>
      %69 = arith.mulf %65, %63 : vector<8x128xf32>
      %70 = arith.addf %68, %69 : vector<8x128xf32>
      %71 = arith.truncf %70 : vector<8x128xf32> to vector<8x128xbf16>
      %c0_41 = arith.constant 0 : index
      %c0_42 = arith.constant 0 : index
      %72 = vector.load %arg13[%c0_41, %c0_42] : memref<8x128xbf16, #tpu.memory_space<vmem>>, vector<8x128xbf16>
      tpu.vector_store %arg13[%c0_41, %c0_42], %71 {strides = array<i32>} : memref<8x128xbf16, #tpu.memory_space<vmem>>, vector<8x128xbf16>,
    } else {
    }
    %c8_i32 = arith.constant 8 : i32
    %3 = arith.muli %arg2, %c8_i32 : i32
    %4 = tpu.assume_multiple %3, 8 : i32
    %c0 = arith.constant 0 : index
    %5 = arith.index_cast %4 : i32 to index
    %c0_1 = arith.constant 0 : index
    %6 = vector.load %arg3[%c0, %5, %c0_1] : memref<1x8x32xbf16, #tpu.memory_space<vmem>>, vector<1x8x32xbf16>
    %7 = vector.shape_cast %6 : vector<1x8x32xbf16> to vector<8x32xbf16>
    %c0_2 = arith.constant 0 : index
    %c0_3 = arith.constant 0 : index
    %c0_4 = arith.constant 0 : index
    %8 = vector.load %arg4[%c0_2, %c0_3, %c0_4] : memref<1x32x128xbf16, #tpu.memory_space<vmem>>, vector<1x32x128xbf16>
    %9 = vector.shape_cast %8 : vector<1x32x128xbf16> to vector<32x128xbf16>
    %cst = arith.constant dense<0.000000e+00> : vector<8x128xf32>
    %10 = tpu.matmul %7, %9, %cst {dimension_numbers = #tpu.dot_dimension_numbers<[1], [0], [0], [1], [0, 0, 1, 1], [], []>} : vector<8x32xbf16>, vector<32x128xbf16>, vector<8x128xf32> -> vector<8x128xf32>
    %c0_5 = arith.constant 0 : index
    %c0_6 = arith.constant 0 : index
    %c0_7 = arith.constant 0 : index
    %11 = vector.load %arg6[%c0_5, %c0_6, %c0_7] : memref<1x1x128xf32, #tpu.memory_space<vmem>>, vector<1x1x128xf32>
    %12 = vector.shape_cast %11 : vector<1x1x128xf32> to vector<1x128xf32>
    %13 = vector.broadcast %12 : vector<1x128xf32> to vector<8x128xf32>
    %14 = arith.addf %10, %13 : vector<8x128xf32>
    %15 = arith.index_cast %4 : i32 to index
    %c0_8 = arith.constant 0 : index
    %16 = vector.load %arg8[%15, %c0_8] : memref<8x128xf32, #tpu.memory_space<vmem>>, vector<8x128xf32>
    %17 = arith.index_cast %4 : i32 to index
    %c0_9 = arith.constant 0 : index
    %18 = vector.load %arg9[%17, %c0_9] : memref<8x128xf32, #tpu.memory_space<vmem>>, vector<8x128xf32>
    %19 = arith.index_cast %4 : i32 to index
    %c0_10 = arith.constant 0 : index
    %20 = vector.load %arg10[%19, %c0_10] : memref<8x128xf32, #tpu.memory_space<vmem>>, vector<8x128xf32>
    %c127_i32 = arith.constant 127 : i32
    %21 = tpu.dynamic_rotate %14 by %c127_i32 dim 1 : vector<8x128xf32>, i32 -> vector<8x128xf32>
    %c1_i32 = arith.constant 1 : i32
    %22 = tpu.dynamic_rotate %14 by %c1_i32 dim 1 : vector<8x128xf32>, i32 -> vector<8x128xf32>
    %23 = arith.mulf %14, %16 : vector<8x128xf32>
    %24 = arith.mulf %21, %18 : vector<8x128xf32>
    %25 = arith.addf %23, %24 : vector<8x128xf32>
    %26 = arith.mulf %22, %20 : vector<8x128xf32>
    %27 = arith.addf %25, %26 : vector<8x128xf32>
    %28 = arith.truncf %27 : vector<8x128xf32> to vector<8x128xbf16>
    %c0_11 = arith.constant 0 : index
    %c0_12 = arith.constant 0 : index
    %29 = vector.load %arg13[%c0_11, %c0_12] : memref<8x128xbf16, #tpu.memory_space<vmem>>, vector<8x128xbf16>
    %cst_13 = arith.constant dense<0.000000e+00> : vector<8x8xf32>
    %30 = tpu.matmul %28, %29, %cst_13 {dimension_numbers = #tpu.dot_dimension_numbers<[1], [1], [0], [0], [0, 0, 1, 0], [], []>} : vector<8x128xbf16>, vector<8x128xbf16>, vector<8x8xf32> -> vector<8x8xf32>
    %c0_14 = arith.constant 0 : index
    %c0_15 = arith.constant 0 : index
    %c0_16 = arith.constant 0 : index
    %31 = vector.load %arg11[%c0_14, %c0_15, %c0_16] : memref<1x1x8xf32, #tpu.memory_space<vmem>>, vector<1x1x8xf32>
    %32 = vector.shape_cast %31 : vector<1x1x8xf32> to vector<1x8xf32>
    %33 = vector.shape_cast %32 : vector<1x8xf32> to vector<1x8xf32>
    %34 = vector.broadcast %33 : vector<1x8xf32> to vector<8x8xf32>
    %35 = tpu.iota {dimensions = array<i32: 0>} : vector<8x8xi32>
    %36 = vector.broadcast %4 : i32 to vector<8x8xi32>
    %37 = arith.addi %36, %35 : vector<8x8xi32>
    %38 = tpu.iota {dimensions = array<i32: 1>} : vector<8x8xi32>
    %39 = arith.cmpi sgt, %37, %38 : vector<8x8xi32>
    %40 = arith.extui %39 : vector<8x8xi1> to vector<8x8xi32>
    %41 = arith.sitofp %40 : vector<8x8xi32> to vector<8x8xf32>
    %42 = arith.mulf %30, %34 : vector<8x8xf32>
    %cst_17 = arith.constant 1.000000e+00 : f32
    %43 = vector.broadcast %cst_17 : f32 to vector<8x8xf32>
    %44 = arith.subf %43, %34 : vector<8x8xf32>
    %45 = arith.addf %44, %41 : vector<8x8xf32>
    %cst_18 = arith.constant 1.76776692E+11 : f32
    %46 = vector.broadcast %cst_18 : f32 to vector<8x8xf32>
    %47 = arith.mulf %45, %46 : vector<8x8xf32>
    %48 = arith.subf %42, %47 : vector<8x8xf32>
    %c0_19 = arith.constant 0 : index
    %c0_20 = arith.constant 0 : index
    %c0_21 = arith.constant 0 : index
    %c0_22 = arith.constant 0 : index
    %49 = vector.load %arg12[%c0_19, %c0_20, %c0_21, %c0_22] : memref<1x1x8x8xf32, #tpu.memory_space<vmem>>, vector<1x1x8x8xf32>
    %50 = vector.shape_cast %49 : vector<1x1x8x8xf32> to vector<8x8xf32>
    %51 = vector.shape_cast %48 : vector<8x8xf32> to vector<1x1x8x8xf32>
    tpu.vector_store %arg12[%c0_19, %c0_20, %c0_21, %c0_22], %51 {strides = array<i32>} : memref<1x1x8x8xf32, #tpu.memory_space<vmem>>, vector<1x1x8x8xf32>,
    return
  }
  func.func @transform_0(%arg0: i32, %arg1: i32, %arg2: i32) -> (i32, i32, i32) {
    %c0_i32 = arith.constant 0 : i32
    %c0_i32_0 = arith.constant 0 : i32
    %c0_i32_1 = arith.constant 0 : i32
    return %arg0, %c0_i32, %c0_i32_0 : i32, i32, i32
  }
  func.func @transform_1(%arg0: i32, %arg1: i32, %arg2: i32) -> (i32, i32, i32) {
    %c0_i32 = arith.constant 0 : i32
    %c0_i32_0 = arith.constant 0 : i32
    %c0_i32_1 = arith.constant 0 : i32
    return %arg1, %c0_i32, %c0_i32_0 : i32, i32, i32
  }
  func.func @transform_2(%arg0: i32, %arg1: i32, %arg2: i32) -> (i32, i32, i32) {
    %c0_i32 = arith.constant 0 : i32
    %c0_i32_0 = arith.constant 0 : i32
    %c0_i32_1 = arith.constant 0 : i32
    return %arg1, %c0_i32, %c0_i32_0 : i32, i32, i32
  }
  func.func @transform_3(%arg0: i32, %arg1: i32, %arg2: i32) -> (i32, i32, i32) {
    %c0_i32 = arith.constant 0 : i32
    %c0_i32_0 = arith.constant 0 : i32
    %c0_i32_1 = arith.constant 0 : i32
    return %arg1, %c0_i32, %c0_i32_0 : i32, i32, i32
  }
  func.func @transform_4(%arg0: i32, %arg1: i32, %arg2: i32) -> (i32, i32, i32) {
    %c0_i32 = arith.constant 0 : i32
    %c0_i32_0 = arith.constant 0 : i32
    %c0_i32_1 = arith.constant 0 : i32
    return %arg1, %c0_i32, %c0_i32_0 : i32, i32, i32
  }
  func.func @transform_5(%arg0: i32, %arg1: i32, %arg2: i32) -> (i32, i32) {
    %c0_i32 = arith.constant 0 : i32
    %c0_i32_0 = arith.constant 0 : i32
    %c0_i32_1 = arith.constant 0 : i32
    return %c0_i32, %c0_i32_0 : i32, i32
  }
  func.func @transform_6(%arg0: i32, %arg1: i32, %arg2: i32) -> (i32, i32) {
    %c0_i32 = arith.constant 0 : i32
    %c0_i32_0 = arith.constant 0 : i32
    %c0_i32_1 = arith.constant 0 : i32
    return %c0_i32, %c0_i32_0 : i32, i32
  }
  func.func @transform_7(%arg0: i32, %arg1: i32, %arg2: i32) -> (i32, i32) {
    %c0_i32 = arith.constant 0 : i32
    %c0_i32_0 = arith.constant 0 : i32
    %c0_i32_1 = arith.constant 0 : i32
    return %c0_i32, %c0_i32_0 : i32, i32
  }
  func.func @transform_8(%arg0: i32, %arg1: i32, %arg2: i32) -> (i32, i32, i32) {
    %c0_i32 = arith.constant 0 : i32
    %c0_i32_0 = arith.constant 0 : i32
    %c0_i32_1 = arith.constant 0 : i32
    return %arg0, %c0_i32, %c0_i32_0 : i32, i32, i32
  }
  func.func @transform_9(%arg0: i32, %arg1: i32, %arg2: i32) -> (i32, i32, i32, i32) {
    %c0_i32 = arith.constant 0 : i32
    %c0_i32_0 = arith.constant 0 : i32
    return %arg0, %arg1, %arg2, %c0_i32 : i32, i32, i32, i32
  }
}

</mosaic_0001>

<bundles_post_ra>
// kernel: tpu_custom_call.1
= control target key start
LH: loop header
LB: loop body
LE: loop exit
PB: predicated region body
PF: predicated region fallthrough
CT: control target
= control target key end

     0   :  { %s2039_s0 = inlined_call_operand.hbm [shape: bf16[2,8,32], index: 0, kind: input, shape index: {}]   ;;  %s2040_s1 = inlined_call_operand.hbm [shape: bf16[4,32,128], index: 1, kind: input, shape index: {}]   ;;  %s2041_s2 = inlined_call_operand.hbm [shape: bf16[4,32,128], index: 2, kind: input, shape index: {}]   ;;  %s2042_s3 = inlined_call_operand.hbm [shape: f32[4,1,128], index: 3, kind: input, shape index: {}]   ;;  %s2043_s4 = inlined_call_operand.hbm [shape: f32[4,1,128], index: 4, kind: input, shape index: {}]   ;;  %s2044_s5 = inlined_call_operand.vmem [shape: f32[8,128], index: 5, kind: input, shape index: {}]   ;;  %s2045_s6 = inlined_call_operand.vmem [shape: f32[8,128], index: 6, kind: input, shape index: {}]   ;;  %s2046_s7 = inlined_call_operand.vmem [shape: f32[8,128], index: 7, kind: input, shape index: {}]   ;;  %s2047_s8 = inlined_call_operand.vmem [shape: f32[2,1,8], index: 8, kind: input, shape index: {}]   ;;  %s2048_s9 = inlined_call_operand.hbm [shape: f32[2,4,8,8], index: 9, kind: output, shape index: {}]  }
   0x1   :  { %2082 = sst [smem:[#allocation37_spill]] %s2039_s0 }
   0x2   :  { %2083 = sst [smem:[#allocation38_spill]] %s2040_s1 }
   0x3   :  { %2084 = sst [smem:[#allocation39_spill]] %s2041_s2 }
   0x4   :  { %2085 = sst [smem:[#allocation40_spill]] %s2042_s3 }
   0x5   :  { %2086 = sst [smem:[#allocation41_spill]] %s2044_s5 }
   0x6   :  { %2087 = sst [smem:[#allocation42_spill]] %s2045_s6 }
   0x7   :  { %2088 = sst [smem:[#allocation43_spill]] %s2046_s7 }
   0x8   :  { %2089 = sst [smem:[#allocation44_spill]] %s2047_s8 }
   0x9   :  { %2090 = sst [smem:[#allocation45_spill]] %s2048_s9 }
   0xa   :  { %14 = vsyncpa [#allocation4], 0 }
   0xb   :  { %16 = vsyncpa [#allocation4 + $0x1], 0 }
   0xc   :  { %17 = vsyncpa [#allocation7], 0 }
   0xd   :  { %19 = vsyncpa [#allocation7 + $0x1], 0 }
   0xe   :  { %20 = vsyncpa [#allocation10], 0 }
   0xf   :  { %22 = vsyncpa [#allocation10 + $0x1], 0 }
  0x10   :  { %23 = vsyncpa [#allocation5], 0 }
  0x11   :  { %25 = vsyncpa [#allocation5 + $0x1], 0  ;;  %s1558_s30 = smov 0   ;;  %s1560_s10 = smov 0  }
  0x12   :  { %s1562_s11 = smov 0   ;;  %s1564_s12 = smov 0  }
  0x13   :  { %s1566_s13 = smov 0   ;;  %s1568_s14 = smov 0  }
  0x14   :  { %s1570_s15 = smov 0   ;;  %s1572_s16 = smov 0  }
  0x15   :  { %s1574_s17 = smov 0   ;;  %s1576_s18 = smov 0  }
  0x16   :  { %s1578_s19 = smov 0   ;;  %s1580_s20 = smov 0  }
  0x17   :  { %s1582_s21 = smov 0   ;;  %s1584_s22 = smov 0  }
  0x18 LB: > { %2091 = sst [smem:[#allocation17_spill]] %s1442_s30  ;;  %p2054_p0 = scmp.eq.s32.totalorder %s1494_s22, 0  ;;  %s1494_s22 = sphi %s1584_s22, %s31_s22   ;;  %s1490_s21 = sphi %s1582_s21, %s2179_s21   ;;  %s1486_s20 = sphi %s1580_s20, %s2171_s20   ;;  %s1482_s19 = sphi %s1578_s19, %s2170_s19   ;;  %s1478_s18 = sphi %s1576_s18, %s2169_s18   ;;  %s1474_s17 = sphi %s1574_s17, %s2178_s17   ;;  %s1470_s16 = sphi %s1572_s16, %s2177_s16   ;;  %s1466_s15 = sphi %s1570_s15, %s2176_s15   ;;  %s1462_s14 = sphi %s1568_s14, %s2167_s14   ;;  %s1458_s13 = sphi %s1566_s13, %s2175_s13   ;;  %s1454_s12 = sphi %s1564_s12, %s2174_s12   ;;  %s1450_s11 = sphi %s1562_s11, %s2165_s11   ;;  %s1446_s10 = sphi %s1560_s10, %s2164_s10   ;;  %s1442_s30 = sphi %s1558_s30, %s2163_s30  }
  0x19   : > { %2092 = sst [smem:[#allocation18_spill]] %s1446_s10  ;;  %p90_p1 = scmp.ne.s32.totalorder %s1462_s14, %s1458_s13 }
  0x1a   : > { %2093 = sst [smem:[#allocation19_spill]] %s1450_s11  ;;  %p2053_p2 = scmp.lt.s32.totalorder %s1494_s22, 8 }
  0x1b   : > { %2094 = sst [smem:[#allocation20_spill]] %s1462_s14  ;;  %p92_p3 = por %p90_p1, %p2054_p0 }
  0x1c   : > { %2095 = sst [smem:[#allocation21_spill]] %s1478_s18  ;;  %s1637_s25 = sand.u32 1, %s1462_s14  }
  0x1d   : > { %2096 = sst [smem:[#allocation22_spill]] %s1482_s19  ;;  %s2051_s26 = sshll.u32 %s1486_s20, 8 }
  0x1e   : > { %2097 = sst [smem:[#allocation23_spill]] %s1486_s20  ;;  %s2052_s27 = sshll.u32 %s1637_s25, 4 }
  0x1f   : > { %2098 = sst [smem:[#allocation24_spill]] %s1490_s21  ;;  %s2101_s1 = sld [smem:[#allocation38_spill]] }
  0x20   : > { %2099 = sst [smem:[#allocation25_spill]] %s1494_s22  ;;  %p1650_p4 = pnand %p2053_p2, %p92_p3 }
  0x21   : > { %2100 = sst [smem:[#allocation26_spill]] %s1637_s25  ;;  %s348_s24 = scalar_lea.vmem [#allocation6], %s2052_s27 }
  0x22   : > { %s2102_s23 = scalar_select %p1650_p4, 1, 0 }
  0x23   : > { %s355_s8 = sshll.u32 %s348_s24, 4  ;;  %s2103_s18 = sand.u32 1, %s1494_s22   ;;  %s1656_s8 = int_to_ptr.vmem [resolvable:$true] %s355_s8 }
  0x24   : > { %s1660_s19 = scalar_lea.sflag [#allocation7], %s2103_s18  ;;  %p1666_p6 = pneg %p1650_p4 }
  0x25   : > { %s1646_s9 = scalar_lea.hbm %s2101_s1, %s2051_s26  ;;  %2104 = sst [smem:[#allocation27_spill]] %s1660_s19 }
  0x26   : > { %s1190_s28 = scalar_lea.hbm %s1646_s9, 256  ;;  %s1195_s24 = scalar_lea.hbm %s2101_s1, 1024 }
  0x27   : > { %p1191_p5 = scmp.ne.s32.totalorder %s1646_s9, %s1190_s28  ;;  %p1196_p9 = scmp.lt.u32.totalorder %s1646_s9, %s2101_s1 }
  0x28   : > { %p1197_p10 = scmp.lt.u32.totalorder %s1195_s24, %s1190_s28  ;;  %p1199_p12 = scmp.lt.u32.totalorder %s1190_s28, %s1646_s9 }
  0x29   : > { %p1193_p7 = pnand %p1666_p6, %p1191_p5 }
  0x2a   : > { %p1198_p11 = por %p1197_p10, %p1196_p9 }
  0x2b   : > { %p1194_p8 = pneg %p1193_p7 }
  0x2c   : > { %p1200_p13 = por %p1199_p12, %p1198_p11 }
  0x2e   : > { %p1201_p1 = pnand %p1200_p13, %p1194_p8 }
  0x30   : > { %1204 = shalt.err (!%p1201_p1)
}
  0x31   : > { %s1205_s18 = scalar_lea.vmem %s1656_s8, 256  ;;  %s1496_s7 = smov [#allocation6]  }
  0x32   : > { %p1206_p3 = scmp.ne.s32.totalorder %s1656_s8, %s1205_s18  ;;  %s1210_s26 = sshll.u32 %s1496_s7, 4  ;;  %s1211_s26 = int_to_ptr.vmem [resolvable:$false] %s1210_s26 }
  0x33   : > { %s1212_s5 = scalar_lea.vmem %s1211_s26, 512  ;;  %p1213_p2 = scmp.lt.s32.totalorder %s1656_s8, %s1211_s26 }
  0x34   : > { %p1208_p5 = pnand %p1206_p3, %p1666_p6  ;;  %p1214_p0 = scmp.lt.s32.totalorder %s1212_s5, %s1205_s18 }
  0x36   : > { %p1209_p7 = pneg %p1208_p5  ;;  %p1215_p9 = por %p1214_p0, %p1213_p2 }
  0x38   : > { %p1216_p10 = pnand %p1215_p9, %p1209_p7 }
  0x3a   : > { %1219 = shalt.err (!%p1216_p10)
}
  0x3b   : > { %s2056_s27 = smov 64   ;;  %s2057_s28 = smov 4  }
  0x3c   : > { %1052 = dma.hbm_to_vmem [thread:$0]  (!%p1650_p4), %s1646_s9, 256, %s1656_s8, %s1660_s19, %s2056_s27, %s2056_s27, %s2057_s28  }
  0x3d   : > { %s2106_s24 = sshll.u32 %s1486_s20, 8  ;;  %s2107_s2 = sld [smem:[#allocation39_spill]] }
  0x3e   : > { %s2108_s5 = sshll.u32 %s1637_s25, 4  ;;  %p982_p0 = scmp.ge.s32.totalorder %s1494_s22, 1 }
  0x3f   : > { %s369_s1 = scalar_lea.vmem [#allocation8], %s2108_s5  ;;  %p424_p2 = scmp.lt.s32.totalorder %s1494_s22, 9 }
  0x40   : > { %s376_s6 = sshll.u32 %s369_s1, 4  ;;  %s980_s0 = sshll.u32 %s1486_s20, 4  ;;  %s1702_s6 = int_to_ptr.vmem [resolvable:$true] %s376_s6 }
  0x41   : > { %2109 = sst [smem:[#allocation28_spill]] %s1702_s6  ;;  %p1707_p8 = pnand %p982_p0, %p424_p2 }
  0x42   : > { %s2112_s3 = sld [smem:[#allocation40_spill]]  ;;  %s1720_s5 = scalar_lea.hbm %s2043_s4, %s980_s0 }
  0x43   : > { %s1698_s26 = scalar_lea.hbm %s2107_s2, %s2106_s24  ;;  %s389_s24 = scalar_lea.vmem [#allocation9], %s1637_s25 }
  0x44   : > { %s2110_s30 = scalar_select %p1707_p8, 1, 0 }
  0x45   : > { %s396_s1 = sshll.u32 %s389_s24, 4  ;;  %s2113_s28 = sand.u32 1, %s1494_s22   ;;  %s397_s1 = int_to_ptr.vmem [resolvable:$true] %s396_s1 }
  0x46   : > { %2111 = sst [smem:[#allocation29_spill]] %s2110_s30  ;;  %s1724_s19 = scalar_lea.sflag [#allocation10], %s2113_s28 }
  0x48   : > { %s1714_s27 = scalar_lea.hbm %s2112_s3, %s980_s0  ;;  %s1225_s6 = scalar_lea.hbm %s2112_s3, 64 }
  0x49   : > { %s1220_s30 = scalar_lea.hbm %s1714_s27, 16  ;;  %p1226_p1 = scmp.lt.u32.totalorder %s1714_s27, %s2112_s3 }
  0x4a   : > { %p1221_p11 = scmp.ne.s32.totalorder %s1714_s27, %s1220_s30  ;;  %p1227_p3 = scmp.lt.u32.totalorder %s1225_s6, %s1220_s30 }
  0x4b   : > { %p1229_p7 = scmp.lt.u32.totalorder %s1220_s30, %s1714_s27 }
  0x4c   : > { %p1223_p12 = pnand %p1221_p11, %p1666_p6  ;;  %p1228_p5 = por %p1227_p3, %p1226_p1 }
  0x4e   : > { %p1224_p13 = pneg %p1223_p12  ;;  %p1230_p9 = por %p1229_p7, %p1228_p5 }
  0x50   : > { %p1231_p10 = pnand %p1230_p9, %p1224_p13 }
  0x52   : > { %1234 = shalt.err (!%p1231_p10)
}
  0x53   : > { %s1235_s0 = scalar_lea.vmem %s397_s1, 16  ;;  %s1499_s28 = smov [#allocation9]  }
  0x54   : > { %p1236_p0 = scmp.ne.s32.totalorder %s397_s1, %s1235_s0  ;;  %s1240_s18 = sshll.u32 %s1499_s28, 4  ;;  %s1241_s18 = int_to_ptr.vmem [resolvable:$false] %s1240_s18 }
  0x55   : > { %s1242_s7 = scalar_lea.vmem %s1241_s18, 32  ;;  %p1243_p12 = scmp.lt.s32.totalorder %s397_s1, %s1241_s18 }
  0x56   : > { %p1238_p2 = pnand %p1236_p0, %p1666_p6  ;;  %p1244_p8 = scmp.lt.s32.totalorder %s1242_s7, %s1235_s0 }
  0x58   : > { %p1239_p11 = pneg %p1238_p2  ;;  %p1245_p4 = por %p1244_p8, %p1243_p12 }
  0x5a   : > { %p1246_p1 = pnand %p1245_p4, %p1239_p11 }
  0x5c   : > { %1249 = shalt.err (!%p1246_p1)
}
  0x5d   : > { %p2114_p3 = scmp.ne.s32.totalorder %s2102_s23, 0  ;;  %s1745_s6 = sadd.s32 4294967295, %s1494_s22  }
  0x5e   : > { %s46_s25 = sadd.s32 1, %s1486_s20  ;;  %s50_s8 = sadd.s32 1, %s1490_s21 }
  0x5f   : > { %1058 = dma.hbm_to_vmem [thread:$0]  (!%p2114_p3), %s1714_s27, 16, %s397_s1, %s1724_s19  }
  0x60   : > { %p48_p4 = scmp.ge.s32.totalorder %s46_s25, 4  ;;  %s57_s9 = sadd.s32 1, %s1474_s17 }
  0x61   : > { %p64_p8 = scmp.ne.s32.totalorder %s1474_s17, %s1470_s16  ;;  %p2116_p13 = scmp.eq.s32.totalorder %s1494_s22, 0 }
  0x62   : > { %s2181_s25 = smov (%p48_p4, %s46_s25), 0  ;;  %s2183_s8 = smov (!%p48_p4, %s50_s8), %s1490_s21 }
  0x63   : > { %2115 = sst [smem:[#allocation30_spill]] %s2181_s25  ;;  %p1758_p5 = por %p2116_p13, %p64_p8 }
  0x64   : > { %p70_p7 = scmp.ne.s32.totalorder %s1470_s16, %s1466_s15  ;;  %p52_p9 = scmp.ge.s32.totalorder %s2183_s8, 2 }
  0x65   : > { %p71_p10 = scmp.eq.s32.totalorder %s1745_s6, 0  ;;  %s80_s1 = ssub.s32 %s1486_s20, %s2181_s25 }
  0x66   : > { %p96_p0 = scmp.ne.s32.totalorder %s1458_s13, %s1454_s12  ;;  %s2118_s24 = sld [smem:[#allocation17_spill]] }
  0x67   : > { %s2185_s8 = smov (%p52_p9, %s2183_s8), 0  ;;  %p1771_p2 = por %p71_p10, %p70_p7 }
  0x68   : > { %2119 = sst [smem:[#allocation31_spill]] %s2185_s8  ;;  %p81_p11 = scmp.eq.s32.totalorder %s80_s1, 0 }
  0x69   : > { %s2120_s0 = scalar_select %p1771_p2, 1, 0 }
  0x6a   : > { %s54_s15 = ssub.s32 %s1490_s21, %s2185_s8  ;;  %p1777_p12 = por %p96_p0, %p71_p10 }
  0x6b   : > { %p55_p1 = scmp.eq.s32.totalorder %s54_s15, 0  ;;  %s275_s12 = sor.u32 %s80_s1, %s54_s15 }
  0x6c   : > { %s2121_s28 = scalar_select %p1777_p12, 1, 0 }
  0x6d   : > { %s2122_s18 = sadd.s32 1, %s1462_s14  ;;  %p278_p4 = scmp.eq.s32.totalorder %s275_s12, 0 }
  0x6e   : > { %s1784_s7 = scalar_select %p81_p11, %s1462_s14, %s2122_s18  }
  0x6f   : > { %s1787_s30 = scalar_select %p55_p1, %s1474_s17, %s57_s9  }
  0x70   : > { %2123 = sst [smem:[#allocation32_spill]] %s1784_s7  ;;  %s280_s3 = sadd.s32 1, %s1450_s11 }
  0x71   : > { %2124 = sst [smem:[#allocation33_spill]] %s1787_s30  ;;  %p290_p8 = scmp.ne.s32.totalorder %s1450_s11, %s1446_s10 }
  0x72   : > { %p291_p13 = scmp.eq.s32.totalorder %s1745_s6, 7  ;;  %p296_p9 = scmp.ne.s32.totalorder %s1446_s10, %s2118_s24 }
  0x73   : > { %s1794_s8 = scalar_select %p278_p4, %s1450_s11, %s280_s3  }
  0x74   : > { %p1796_p7 = por %p291_p13, %p290_p8  ;;  %s2128_s1 = sadd.s32 4294967294, %s1494_s22  }
  0x75   : > { %2125 = sst [smem:[#allocation34_spill]] %s1794_s8  ;;  %p297_p10 = scmp.eq.s32.totalorder %s2128_s1, 7 }
  0x76   : > { %s2126_s25 = scalar_select %p1796_p7, 1, 0 }
  0x77   : > { %s2069_s9 = sand.u32 1, %s1474_s17   ;;  %p1807_p0 = por %p297_p10, %p296_p9 }
  0x78   : > { %2127 = sst [smem:[#allocation35_spill]] %s2126_s25  ;;  %s972_s15 = sshll.u32 %s2069_s9, 2 }
  0x79   : > { %s2129_s12 = scalar_select %p1807_p0, 1, 0 }
  0x7a   : > { %s973_s18 = sshll.u32 %s1490_s21, 6  ;;  %s330_s20 = scalar_lea.vmem [#allocation3], %s972_s15 }
  0x7b   : > { %2130 = sst [smem:[#allocation36_spill]] %s2129_s12  ;;  %s337_s3 = sshll.u32 %s330_s20, 4  ;;  %s1817_s3 = int_to_ptr.vmem [resolvable:$true] %s337_s3 }
  0x7c   : > { %s2131_s14 = sld [smem:[#allocation37_spill]]  ;;  %p2133_p11 = scmp.lt.s32.totalorder %s1494_s22, 8 }
  0x7d   : > { %s1250_s1 = scalar_lea.hbm %s1698_s26, 256  ;;  %s1255_s9 = scalar_lea.hbm %s2107_s2, 1024 }
  0x7e   : > { %p1823_p1 = pnand %p2133_p11, %p1758_p5  ;;  %p1251_p4 = scmp.ne.s32.totalorder %s1698_s26, %s1250_s1 }
  0x7f   : > { %p1256_p9 = scmp.lt.u32.totalorder %s1698_s26, %s2107_s2  ;;  %p1257_p10 = scmp.lt.u32.totalorder %s1255_s9, %s1250_s1 }
  0x80   : > { %s2134_s24 = scalar_select %p1823_p1, 1, 0 }
  0x81   : > { %p1253_p8 = pnand %p1251_p4, %p1666_p6  ;;  %p1258_p0 = por %p1257_p10, %p1256_p9 }
  0x82   : > { %s2132_s8 = smov %s2131_s14  ;;  %s1815_s11 = scalar_lea.hbm %s2131_s14, %s973_s18 }
  0x83   : > { %p1254_p13 = pneg %p1253_p8  ;;  %p1259_p7 = scmp.lt.u32.totalorder %s1250_s1, %s1698_s26 }
  0x85   : > { %p1260_p5 = por %p1259_p7, %p1258_p0 }
  0x87   : > { %p1261_p11 = pnand %p1260_p5, %p1254_p13 }
  0x89   : > { %1264 = shalt.err (!%p1261_p11)
}
  0x8a   : > { %s2135_s27 = sld [smem:[#allocation28_spill]]  ;;  %s1500_s18 = smov [#allocation8]  }
  0x8b   : > { %s1270_s15 = sshll.u32 %s1500_s18, 4  ;;  %s1271_s15 = int_to_ptr.vmem [resolvable:$false] %s1270_s15 }
  0x8c   : > { %s1272_s20 = scalar_lea.vmem %s1271_s15, 512 }
  0x90   : > { %s1265_s7 = scalar_lea.vmem %s2135_s27, 256  ;;  %p1273_p2 = scmp.lt.s32.totalorder %s2135_s27, %s1271_s15 }
  0x91   : > { %p1266_p4 = scmp.ne.s32.totalorder %s2135_s27, %s1265_s7  ;;  %p1274_p1 = scmp.lt.s32.totalorder %s1272_s20, %s1265_s7 }
  0x93   : > { %p1268_p8 = pnand %p1266_p4, %p1666_p6  ;;  %p1275_p9 = por %p1274_p1, %p1273_p2 }
  0x95   : > { %p1269_p12 = pneg %p1268_p8 }
  0x97   : > { %p1276_p10 = pnand %p1275_p9, %p1269_p12 }
  0x99   : > { %1279 = shalt.err (!%p1276_p10)
}
  0x9a   : > { %s2136_s9 = smov 4   ;;  %s2137_s1 = smov 64  }
  0x9b   : > { %s2138_s30 = sld [smem:[#allocation27_spill]]  ;;  %s2139_s14 = sld [smem:[#allocation26_spill]] }
  0x9c   : > { %s2140_s15 = sand.u32 1, %s1474_s17   ;;  %s1280_s2 = scalar_lea.hbm %s1815_s11, 64 }
  0x9d   : > { %s327_s20 = scalar_lea.sflag [#allocation4], %s2140_s15  ;;  %p1281_p2 = scmp.ne.s32.totalorder %s1815_s11, %s1280_s2 }
  0x9e   : > { %p2141_p12 = scmp.ne.s32.totalorder %s2134_s24, 0  ;;  %s1285_s22 = scalar_lea.hbm %s2132_s8, 128 }
  0x9f   : > { %p1286_p13 = scmp.lt.u32.totalorder %s1815_s11, %s2132_s8  ;;  %p1287_p5 = scmp.lt.u32.totalorder %s1285_s22, %s1280_s2 }
  0xa0   : > { %p1282_p7 = pneg %p2141_p12  ;;  %p1289_p4 = scmp.lt.u32.totalorder %s1280_s2, %s1815_s11 }
  0xa1   : > { %1055 = dma.hbm_to_vmem [thread:$0]  (!%p2114_p3), %s1698_s26, 256, %s2135_s27, %s2138_s30, %s2137_s1, %s2137_s1, %s2136_s9  }
  0xa2   : > { %s406_s7 = scalar_lea.vmem [#allocation11], %s2139_s14  ;;  %p1283_p0 = pnand %p1282_p7, %p1281_p2 }
  0xa3   : > { %s1853_s18 = sshll.u32 %s406_s7, 4  ;;  %p1288_p11 = por %p1287_p5, %p1286_p13  ;;  %s414_s18 = int_to_ptr.vmem [resolvable:$true] %s1853_s18 }
  0xa4   : > { %p1284_p1 = pneg %p1283_p0 }
  0xa5   : > { %p1290_p8 = por %p1289_p4, %p1288_p11 }
  0xa7   : > { %p1291_p9 = pnand %p1290_p8, %p1284_p1 }
  0xa9   : > { %1294 = shalt.err (!%p1291_p9)
}
  0xaa   : > { %s1295_s26 = scalar_lea.vmem %s1817_s3, 64  ;;  %s1501_s21 = smov [#allocation3]  }
  0xab   : > { %p1296_p10 = scmp.ne.s32.totalorder %s1817_s3, %s1295_s26  ;;  %s1300_s12 = sshll.u32 %s1501_s21, 4  ;;  %s1301_s12 = int_to_ptr.vmem [resolvable:$false] %s1300_s12 }
  0xac   : > { %s1302_s10 = scalar_lea.vmem %s1301_s12, 128  ;;  %p1303_p3 = scmp.lt.s32.totalorder %s1817_s3, %s1301_s12 }
  0xad   : > { %p1298_p2 = pnand %p1296_p10, %p1282_p7  ;;  %p1304_p13 = scmp.lt.s32.totalorder %s1302_s10, %s1295_s26 }
  0xaf   : > { %p1299_p0 = pneg %p1298_p2  ;;  %p1305_p5 = por %p1304_p13, %p1303_p3 }
  0xb1   : > { %p1306_p11 = pnand %p1305_p5, %p1299_p0 }
  0xb3   : > { %1309 = shalt.err (!%p1306_p11)
}
  0xb4   : > { %1049 = dma.hbm_to_vmem [thread:$0]  (!%p2141_p12), %s1815_s11, 64, %s1817_s3, %s327_s20  }
  0xb5   : > { %s1310_s2 = scalar_lea.hbm %s1720_s5, 16  ;;  %s1315_s27 = scalar_lea.hbm %s2043_s4, 64 }
  0xb6   : > { %p1311_p7 = scmp.ne.s32.totalorder %s1720_s5, %s1310_s2  ;;  %p1316_p3 = scmp.lt.u32.totalorder %s1720_s5, %s2043_s4 }
  0xb7   : > { %p1317_p8 = scmp.lt.u32.totalorder %s1315_s27, %s1310_s2  ;;  %p1319_p10 = scmp.lt.u32.totalorder %s1310_s2, %s1720_s5 }
  0xb8   : > { %p1313_p1 = pnand %p1311_p7, %p1666_p6 }
  0xb9   : > { %p1318_p9 = por %p1317_p8, %p1316_p3 }
  0xba   : > { %p1314_p4 = pneg %p1313_p1 }
  0xbb   : > { %p1320_p2 = por %p1319_p10, %p1318_p9 }
  0xbd   : > { %p1321_p0 = pnand %p1320_p2, %p1314_p4 }
  0xbf   : > { %1324 = shalt.err (!%p1321_p0)
}
  0xc0   : > { %s1325_s11 = scalar_lea.vmem %s414_s18, 16  ;;  %s1502_s3 = smov [#allocation11]  }
  0xc1   : > { %p1326_p12 = scmp.ne.s32.totalorder %s414_s18, %s1325_s11  ;;  %s1330_s1 = sshll.u32 %s1502_s3, 4  ;;  %s1331_s1 = int_to_ptr.vmem [resolvable:$false] %s1330_s1 }
  0xc2   : > { %s1332_s30 = scalar_lea.vmem %s1331_s1, 32  ;;  %p1333_p11 = scmp.lt.s32.totalorder %s414_s18, %s1331_s1 }
  0xc3   : > { %p1328_p13 = pnand %p1326_p12, %p1666_p6  ;;  %p1334_p7 = scmp.lt.s32.totalorder %s1332_s30, %s1325_s11 }
  0xc5   : > { %p1329_p5 = pneg %p1328_p13  ;;  %p1335_p1 = por %p1334_p7, %p1333_p11 }
  0xc7   : > { %p1336_p3 = pnand %p1335_p1, %p1329_p5 }
  0xc9   : > { %1339 = shalt.err (!%p1336_p3)
}
  0xca   : > { %p2142_p8 = scmp.ne.s32.totalorder %s2102_s23, 0  ;;  %s2143_s14 = sld [smem:[#allocation29_spill]] }
  0xcc   : > { %1061 = dma.hbm_to_vmem [thread:$0]  (!%p2142_p8), %s1720_s5, 16, %s414_s18, %s1724_s19  }
  0xd0   : > { %p2144_p4 = scmp.ne.s32.totalorder %s2143_s14, 0 }
  0xd1   : > { %s430_s29 = sand.u32 (!%p2144_p4), 1, %s1470_s16   ;;  %p2145_p6 = scmp.ne.s32.totalorder (!%p2144_p4), %s2120_s0, 0 }
  0xd2   : > { %428 = sbr.rel (%p2144_p4) target bundleno = 820 (0x334), region = 56  ;;  %s1904_s7 = sshll.u32 (!%p2144_p4), %s430_s29, 2 }
  0xd3   : > { %s431_s15 = scalar_lea.sflag (!%p2144_p4), [#allocation4], %s430_s29  ;;  %s434_s20 = scalar_lea.vmem (!%p2144_p4), [#allocation3], %s1904_s7 }
  0xd9   : > { %1425 = dma.done.wait (%p2145_p6), %s431_s15, 64  }
  0xda   : > { %1427 = vsyncadd (%p2145_p6), %s431_s15, 4294967232  ;;  %s439_s19 = sand.u32 1, %s1745_s6   ;;  %s1913_s23 = sand.u32 1, %s1458_s13  }
  0xdb   : > { %s984_s5 = sshll.u32 %s1913_s23, 4  ;;  %s440_s18 = scalar_lea.sflag [#allocation7], %s439_s19 }
  0xdc   : > { %s443_s26 = scalar_lea.vmem [#allocation6], %s984_s5  ;;  %p2146_p9 = scmp.ne.s32.totalorder %s2121_s28, 0 }
  0xde   : > { %1429 = dma.done.wait (%p2146_p9), %s440_s18, 512  }
  0xdf   : > { %1431 = vsyncadd (%p2146_p9), %s440_s18, 4294966784  ;;  %s452_s21 = scalar_lea.vmem [#allocation8], %s984_s5  ;;  %s458_s0 = scalar_lea.sflag [#allocation10], %s439_s19 }
  0xe0   : > { %s460_s12 = scalar_lea.vmem [#allocation9], %s1913_s23 }
  0xe1   : > { %1433 = dma.done.wait (%p2146_p9), %s458_s0, 32  }
  0xe2   : > { %1435 = vsyncadd (%p2146_p9), %s458_s0, 4294967264  ;;  %v1503_v0 = vmov 0.0   ;;  %vm1504_vm0 = vmmov 0   ;;  %v1186_v1 = vld [vmem:[%s452_s21] sm:$0xff]   ;;  %v1188_v3 = vld [vmem:[%s452_s21 + $0x8] sm:$0xff]   ;;  %vm556_vm1 = vcmask 261120   ;;  %v751_v39 = vlaneseq }
  0xe3   : > { %1012 = vmatprep.subr.bf16.mxu0 %v1503_v0  ;;  %1020 = vmatprep.subr.bf16.mxu1 %v1503_v0  ;;  %v1187_v2 = vld [vmem:[%s443_s26] sm:$0xff]   ;;  %v1189_v4 = vld [vmem:[%s443_s26 + $0x8] sm:$0xff]   ;;  %s468_s6 = scalar_lea.vmem [#allocation11], %s1913_s23  ;;  %s1505_s28 = smov 127   ;;  %vm765_vm3 = vcmask 64512  }
  0xe4   : > { %1016 = vmatprep.mubr.msk.bf16.mxu0 %vm1504_vm0, %v1503_v0  ;;  %1024 = vmatprep.mubr.msk.bf16.mxu1 %vm1504_vm0, %v1503_v0  ;;  %v532_v5 = vld [vmem:[%s434_s20] sm:$0xf]  ;;  %v987_v7 = vld [vmem:[%s468_s6] ss:$0 sm:$0xff]  ;;  %s1506_s10 = smov 1   ;;  %s2147_s25 = sld [smem:[#allocation42_spill]] }
  0xe5   : > { %1013 = vmatpush3.bf16.msra.mxu0 %v1186_v1  ;;  %1021 = vmatpush3.bf16.msra.mxu1 %v1187_v2  ;;  %v619_v6 = vld [vmem:[%s434_s20] sm:$0xf]  ;;  %v991_v8 = vld [vmem:[%s460_s12] ss:$0 sm:$0xff]  ;;  %s2148_s9 = sld [smem:[#allocation41_spill]]  ;;  %s2149_s1 = sld [smem:[#allocation43_spill]] }
  0xe6   : > { %1014 = vmatprep.subr.bf16.mxu0 %v1503_v0  ;;  %1022 = vmatprep.subr.bf16.mxu1 %v1503_v0  ;;  %s2150_s30 = sld [smem:[#allocation22_spill]]  ;;  %s2151_s14 = sld [smem:[#allocation18_spill]]  ;;  %v752_v40 = vshrl.u32 %v751_v39, 7  ;;  %v756_v41 = vand.u32 127, %v751_v39 }
  0xe7   : > { %s2152_s29 = sld [smem:[#allocation21_spill]]  ;;  %s2153_s19 = sld [smem:[#allocation44_spill]] }
  0xe8   : > { %vm757_vm2 = vcmp.gt.s32.totalorder %v752_v40, %v756_v41  ;;  %s2154_s0 = sld [smem:[#allocation35_spill]]  ;;  %s2155_s22 = sld [smem:[#allocation45_spill]] }
  0xe9   : > { %1015 = vmatpush3.bf16.msra.mxu0 %v1188_v3  ;;  %1023 = vmatpush3.bf16.msra.mxu1 %v1189_v4  ;;  %v996_v44 = vsel %vm757_vm2, 1.0, %v1503_v0  ;;  %s1507_s11 = smov [#allocation12]  }
  0xea   : > { %1028 = vmatprep.subr.bf16.mxu0 %v1503_v0  ;;  %v690_v19 = vld [vmem:[%s2147_s25] sm:$0xff]  ;;  %s1344_s3 = sshll.u32 %s1507_s11, 4  ;;  %s1345_s3 = int_to_ptr.vmem [resolvable:$false] %s1344_s3 }
  0xeb   : > { %v688_v20 = vld [vmem:[%s2148_s9] sm:$0xff] }
  0xec   : > { %1017 = vmatmul.mubr.msk.bf16.vlgmr.msra.gmra.mrb[0].mxu0 %vm556_vm1, %v532_v5  ;;  %1025 = vmatmul.mubr.msk.bf16.vlgmr.msra.gmra.mrb[0].mxu1 %vm556_vm1, %v619_v6  ;;  %v692_v23 = vld [vmem:[%s2149_s1] sm:$0xff]  ;;  %p524_p10 = scmp.lt.s32.totalorder %s2150_s30, 1  ;;  %s521_s5 = sand.u32 1, %s2151_s14  }
  0xed   : > { %1030 = vmatprep.mubr.msk.bf16.mxu0 %vm1504_vm0, %v1503_v0  ;;  %s986_s18 = sshll.u32 %s521_s5, 3  ;;  %s998_s26 = sshll.u32 %s2150_s30, 2 }
  0xee   : > { %s525_s7 = scalar_select %p524_p10, %s2150_s30, 1 }
  0xef   : > { %s780_s21 = sadd.s32 %s2152_s29, %s998_s26  ;;  %s523_s6 = scalar_lea.vmem [#allocation12], %s986_s18 }
  0xf0   : > { %s526_s23 = scalar_lea.vmem %s2153_s19, %s525_s7  ;;  %s999_s12 = sshll.u32 %s780_s21, 7 }
  0xf1   : > { %v995_v42 = vld [vmem:[%s526_s23] ss:$0 sm:$0xff]  ;;  %s2156_s25 = smov %s2155_s22  ;;  %s1962_s27 = scalar_lea.hbm %s2155_s22, %s999_s12 }
  0xf2   : > { %v761_v43 = vsub.f32 1.0, %v995_v42  ;;  %s768_s24 = scalar_lea.sflag [#allocation5], %s521_s5  ;;  %p2157_p0 = scmp.ne.s32.totalorder %s2154_s0, 0 }
  0xf3   : > { %s1346_s1 = scalar_lea.vmem %s1345_s3, 256 }
  0xf4   : > { %v762_v45 = vadd.f32 %v996_v44, %v761_v43 }
  0xf6   : > { %v763_v46 = vmul.f32 1.7677669e+11, %v762_v45 }
 0x1bf   : > { %v594_v9 = vpop.f32.mrb[0].mxu0  ;;  %v681_v11 = vpop.f32.mrb[0].mxu1 }
 0x1c0   : > { %v595_v10 = vadd.f32 %v987_v7, %v594_v9  ;;  %v1018_v12 = vpop.f32.mrb[1].mxu0  ;;  %v682_v13 = vadd.f32 %v991_v8, %v681_v11  ;;  %v1026_v15 = vpop.f32.mrb[1].mxu1 }
 0x1c1   : > { %v597_v14 = vpop.f32.mrb[2].mxu0  ;;  %v684_v17 = vpop.f32.mrb[2].mxu1 }
 0x1c2   : > { %603 = vrot.lane.b32.xlu0 %v595_v10, %s1505_s28  ;;  %v1019_v16 = vpop.f32.mrb[3].mxu0  ;;  %693 = vrot.lane.b32.xlu1 %v682_v13, %s1505_s28  ;;  %v1027_v18 = vpop.f32.mrb[3].mxu1  ;;  %v607_v24 = vmul.f32 %v688_v20, %v595_v10  ;;  %v697_v33 = vmul.f32 %v688_v20, %v682_v13  ;;  %s784_s28 = sshll.u32 %s523_s6, 4  ;;  %s1964_s28 = int_to_ptr.vmem [resolvable:$true] %s784_s28 }
 0x1c3   : > { %s1340_s9 = scalar_lea.vmem %s1964_s28, 128  ;;  %p1347_p5 = scmp.lt.s32.totalorder %s1964_s28, %s1345_s3 }
 0x1c4   : > { %p1341_p2 = scmp.ne.s32.totalorder %s1964_s28, %s1340_s9  ;;  %p1348_p11 = scmp.lt.s32.totalorder %s1346_s1, %s1340_s9 }
 0x1c6   : > { %605 = vrot.lane.b32.xlu0 %v595_v10, %s1506_s10  ;;  %695 = vrot.lane.b32.xlu1 %v682_v13, %s1506_s10  ;;  %p1342_p12 = pnand %p1341_p2, %p2157_p0  ;;  %p1349_p7 = por %p1348_p11, %p1347_p5 }
 0x1c8   : > { %p1343_p13 = pneg %p1342_p12 }
 0x1ca   : > { %p1350_p1 = pnand %p1349_p7, %p1343_p13 }
 0x234   : > { %v604_v21 = vpop.permute.xlu0 %603  ;;  %v694_v28 = vpop.permute.xlu1 %693 }
 0x235   : > { %v608_v22 = vmul.f32 %v690_v19, %v604_v21  ;;  %v698_v32 = vmul.f32 %v694_v28, %v690_v19 }
 0x237   : > { %v609_v26 = vadd.f32 %v608_v22, %v607_v24  ;;  %v699_v35 = vadd.f32 %v698_v32, %v697_v33 }
 0x238   : > { %v606_v25 = vpop.permute.xlu0 %605  ;;  %v696_v31 = vpop.permute.xlu1 %695 }
 0x239   : > { %v610_v27 = vmul.f32 %v692_v23, %v606_v25  ;;  %v700_v34 = vmul.f32 %v696_v31, %v692_v23 }
 0x23b   : > { %v611_v29 = vadd.f32 %v610_v27, %v609_v26  ;;  %v701_v37 = vadd.f32 %v700_v34, %v699_v35 }
 0x23d   : > { %v612_v30 = vpack.c.bf16 %v611_v29, %v611_v29  ;;  %v702_v38 = vpack.c.bf16 %v701_v37, %v701_v37 }
 0x23f   : > { %613 = vst [vmem:[#allocation2] sm:$0xf] %v612_v30 }
 0x246   : > { %v703_v36 = vld [vmem:[#allocation2] sm:$0xf] }
 0x247   : > { %1029 = vmatpush3.bf16.xpose.msra.mxu0 %v703_v36 }
 0x24e   : > { %1031 = vmatmul.mubr.bf16.vlgmr.msra.gmra.mrb[4].mxu0 %v702_v38 }
 0x321   : > { %v738_v47 = vpop.f32.mrb[4].mxu0 }
 0x322   : > { %v760_v48 = vmul.f32 %v995_v42, %v738_v47  ;;  %v1032_v49 = vpop.f32.mrb[5].mxu0 }
 0x323   : > { %v741_v50 = vpop.f32.mrb[6].mxu0 }
 0x324   : > { %v764_v51 = vsub.f32 %v760_v48, %v763_v46  ;;  %v1033_v52 = vpop.f32.mrb[7].mxu0 }
 0x326   : > { %766 = vst.msk [vmem:[%s523_s6] sm:$0xff] %vm765_vm3, %v764_v51 }
 0x327   : > { %1353 = shalt.err (!%p1350_p1)
}
 0x328   : > { %s1354_s30 = scalar_lea.hbm %s1962_s27, 128  ;;  %s1358_s7 = scalar_lea.hbm %s2156_s25, 1024 }
 0x329   : > { %p1355_p3 = scmp.ne.s32.totalorder %s1962_s27, %s1354_s30  ;;  %p1359_p6 = scmp.lt.u32.totalorder %s1962_s27, %s2156_s25 }
 0x32a   : > { %p1360_p9 = scmp.lt.u32.totalorder %s1358_s7, %s1354_s30  ;;  %p1362_p2 = scmp.lt.u32.totalorder %s1354_s30, %s1962_s27 }
 0x32b   : > { %p1356_p8 = pnand %p1355_p3, %p2157_p0 }
 0x32c   : > { %p1361_p10 = por %p1360_p9, %p1359_p6 }
 0x32d   : > { %p1357_p4 = pneg %p1356_p8 }
 0x32e   : > { %p1363_p12 = por %p1362_p2, %p1361_p10 }
 0x330   : > { %p1364_p13 = pnand %p1363_p12, %p1357_p4 }
 0x332   : > { %1367 = shalt.err (!%p1364_p13)
}
 0x333   : > { %1044 = dma.vmem_to_hbm [thread:$0]  (%p2157_p0), %s1964_s28, 128, %s1962_s27, %s768_s24  }
 0x334 PF: > { %s2158_s19 = sld [smem:[#allocation25_spill]]  ;;  %s2159_s23 = sld [smem:[#allocation17_spill]] }
 0x335   : > { %s2160_s5 = sld [smem:[#allocation36_spill]] }
 0x33a   : > { %p1067_p5 = scmp.ge.s32.totalorder %s2158_s19, 2  ;;  %s796_s18 = sand.u32 1, %s2159_s23  }
 0x33b   : > { %p2161_p11 = scmp.ne.s32.totalorder %s2160_s5, 0  ;;  %s797_s26 = scalar_lea.sflag [#allocation5], %s796_s18 }
 0x33d   : > { %p1063_p7 = pnand %p1067_p5, %p2161_p11 }
 0x33f   : > { %1437 = dma.done.wait (!%p1063_p7), %s797_s26, 128  }
 0x340   : > { %1439 = vsyncadd (!%p1063_p7), %s797_s26, 4294967168  ;;  %s31_s22 = sadd.s32 1, %s2158_s19   ;;  %s2163_s30 = sld [smem:[#allocation18_spill]] }
 0x341   : > { %p1992_p1 = scmp.ge.s32.totalorder %s31_s22, 10   ;;  %s2164_s10 = sld [smem:[#allocation19_spill]] }
 0x342   : > { %s2165_s11 = sld [smem:[#allocation34_spill]]  ;;  %s2166_s0 = sld [smem:[#allocation20_spill]] }
 0x343   : > { %s2167_s14 = sld [smem:[#allocation32_spill]]  ;;  %s2168_s6 = sld [smem:[#allocation33_spill]] }
 0x344   : > { %s2169_s18 = sld [smem:[#allocation23_spill]]  ;;  %s2170_s19 = sld [smem:[#allocation24_spill]] }
 0x345   : > { %s2171_s20 = sld [smem:[#allocation30_spill]]  ;;  %s2172_s28 = sld [smem:[#allocation31_spill]] }
 0x346   : > { %s2174_s12 = smov %s1458_s13  ;;  %s2176_s15 = smov %s1470_s16 }
 0x347   : > { %s2177_s16 = smov %s1474_s17  ;;  %30 = sbr.rel (!%p1992_p1) target bundleno = 24 (0x18), region = 160 }
 0x348   : > { %s2175_s13 = smov %s2166_s0 }
 0x349   : > { %s2178_s17 = smov %s2168_s6 }
 0x34b   : > { %s2179_s21 = smov %s2172_s28 }
 0x34e   :  { %802 = vsyncpa [#allocation4], 1 }
 0x34f   :  { %804 = vsyncpa [#allocation4 + $0x1], 1 }
 0x350   :  { %805 = vsyncpa [#allocation7], 1 }
 0x351   :  { %807 = vsyncpa [#allocation7 + $0x1], 1 }
 0x352   :  { %808 = vsyncpa [#allocation10], 1 }
 0x353   :  { %810 = vsyncpa [#allocation10 + $0x1], 1 }
 0x354   :  { %811 = vsyncpa [#allocation5], 1 }
 0x355   :  { %813 = vsyncpa [#allocation5 + $0x1], 1 }

</bundles_post_ra>
